<compile_context>
chip_gen: v6e
topology: v6e:2x2x1
jax: 0.10.0
libtpu: 0.0.40
codegen_flags: <defaults>
</compile_context>

<pallas_src>
import functools

import jax
import jax.numpy as jnp
from jax import lax
from jax.experimental import pallas as pl
from jax.experimental.pallas import tpu as pltpu


def _repvgg_kernel(x_ref, w_ref, b_ref, o_ref, *, Ht, W, Cin, Cot):
    # x_ref: (1, 1, Ht+2, W+2, Cin)  zero-padded, halo'd input row window
    # w_ref: (9*Cin, Cot)            BN-folded 3x3 weights (1x1 folded into tap 4)
    # b_ref: (1, Cot)                combined BN bias (f32)
    # o_ref: (1, Ht, W, Cot)
    x = x_ref[0, 0]                                       # (Ht+2, W+2, Cin)

    # Build the im2col tile once (column order = tap-major, channel-minor, i.e.
    # col = (kh*3+kw)*Cin + ci, matching w_ref rows) and do a single K=9*Cin
    # matmul on the MXU.
    # TODO(synk): for very large tiles the padded-width contiguous-slab trick
    # would avoid these strided slice copies at the cost of ~(W+2)/W extra FLOPs.
    taps = [x[kh:kh + Ht, kw:kw + W, :] for kh in range(3) for kw in range(3)]
    patches = jnp.concatenate(taps, axis=-1).reshape(Ht * W, 9 * Cin)

    acc = jnp.dot(patches, w_ref[...], preferred_element_type=jnp.float32)
    y = jnp.maximum(acc + b_ref[...], 0.0)                # bias + ReLU in f32
    o_ref[...] = y.reshape(1, Ht, W, Cot).astype(o_ref.dtype)


def repvgg_block(x_nchw, params, *, row_tile=8, cout_tile=256,
                 compute_dtype=jnp.float32):
    """RepVggBlock forward. x_nchw: (N, Cin, H, W) float32 -> (N, Cout, H, W)."""
    (w3, g3, b3, m3, v3), (w1, g1, b1, m1, v1), eps = params
    Cout, Cin, _, _ = w3.shape
    N, _, H, W = x_nchw.shape

    # ---- fold eval-mode BN into conv weights/bias, fold 1x1 into 3x3 center ----
    inv3 = g3 / jnp.sqrt(v3 + eps)                        # (Cout,)
    inv1 = g1 / jnp.sqrt(v1 + eps)
    w3f = w3 * inv3[:, None, None, None]                  # (Cout, Cin, 3, 3)
    w1f = w1[:, :, 0, 0] * inv1[:, None]                  # (Cout, Cin)
    bias = (b3 - m3 * inv3) + (b1 - m1 * inv1)            # (Cout,)

    w9 = jnp.transpose(w3f, (2, 3, 1, 0)).reshape(9, Cin, Cout)   # tap-major
    w9 = w9.at[4].add(jnp.transpose(w1f, (1, 0)))                 # 1x1 -> center tap
    w_mat = w9.reshape(9 * Cin, Cout).astype(compute_dtype)       # (9*Cin, Cout)
    b_mat = bias.reshape(1, Cout).astype(jnp.float32)

    # ---- tile sizes --------------------------------------------------------
    Ht = min(row_tile, H)
    nH = -(-H // Ht)
    Hp = nH * Ht
    if Cout % cout_tile == 0:
        Cot = cout_tile
    elif Cout % 128 == 0:
        Cot = 128
    else:
        Cot = Cout                                        # tiny-channel fallback
    nCo = Cout // Cot
    Wp = W + 2

    # NCHW -> NHWC (unavoidable relayout), zero pad by 1, and extract overlapping
    # halo'd row windows so the kernel's BlockSpecs are plain non-overlapping
    # blocks and get full auto-pipelining:  x_win: (N, nH, Ht+2, W+2, Cin)
    x_nhwc = jnp.transpose(x_nchw, (0, 2, 3, 1)).astype(compute_dtype)
    x_p = jnp.pad(x_nhwc, ((0, 0), (1, 1 + (Hp - H)), (1, 1), (0, 0)))
    row_idx = jnp.arange(nH)[:, None] * Ht + jnp.arange(Ht + 2)[None, :]
    x_win = x_p[:, row_idx]

    kernel = functools.partial(_repvgg_kernel, Ht=Ht, W=W, Cin=Cin, Cot=Cot)

    # Explicit VMEM budget (covers all generations; tiles are sized small).
    isz = jnp.dtype(compute_dtype).itemsize
    in_tile = (Ht + 2) * Wp * Cin * isz
    out_tile = Ht * W * Cot * 4
    w_bytes = 9 * Cin * Cot * isz + Cot * 4
    im2col_bytes = Ht * W * 9 * Cin * isz
    vmem_limit = int(min(max(2 * (in_tile + out_tile) + 2 * w_bytes
                             + 2 * im2col_bytes, 32 * 1024 * 1024),
                         64 * 1024 * 1024))

    out_nhwc = pl.pallas_call(
        kernel,
        out_shape=jax.ShapeDtypeStruct((N, Hp, W, Cout), jnp.float32),
        grid_spec=pltpu.PrefetchScalarGridSpec(
            num_scalar_prefetch=0,
            grid=(N, nCo, nH),
            in_specs=[
                pl.BlockSpec((1, 1, Ht + 2, Wp, Cin),
                             lambda n, co, h: (n, h, 0, 0, 0)),
                pl.BlockSpec((9 * Cin, Cot), lambda n, co, h: (0, co),
                             pipeline_mode=pl.Buffered(1)),
                pl.BlockSpec((1, Cot), lambda n, co, h: (0, co),
                             pipeline_mode=pl.Buffered(1)),
            ],
            out_specs=pl.BlockSpec((1, Ht, W, Cot),
                                   lambda n, co, h: (n, h, 0, co)),
        ),
        compiler_params=pltpu.CompilerParams(
            dimension_semantics=("parallel", "parallel", "parallel"),
            vmem_limit_bytes=vmem_limit),
    )(x_win, w_mat, b_mat)

    out_nhwc = out_nhwc[:, :H]                            # drop row padding
    return jnp.transpose(out_nhwc, (0, 3, 1, 2))          # back to NCHW


def _reference(x_nchw, params):
    """Plain-JAX reference of the same forward (eval-mode BN)."""
    (w3, g3, b3, m3, v3), (w1, g1, b1, m1, v1), eps = params

    def branch(x, w, g, b, m, v, pad):
        y = lax.conv_general_dilated(
            x, w, window_strides=(1, 1), padding=[(pad, pad), (pad, pad)],
            dimension_numbers=("NCHW", "OIHW", "NCHW"))
        inv = g / jnp.sqrt(v + eps)
        return y * inv[None, :, None, None] + (b - m * inv)[None, :, None, None]

    y = branch(x_nchw, w3, g3, b3, m3, v3, 1) + branch(x_nchw, w1, g1, b1, m1, v1, 0)
    return jnp.maximum(y, 0.0)


def _make_params(key, ch_in, ch_out):
    ks = jax.random.split(key, 10)
    w3 = jax.random.normal(ks[0], (ch_out, ch_in, 3, 3), jnp.float32) * 0.1
    g3 = jax.random.uniform(ks[1], (ch_out,), jnp.float32, 0.5, 1.5)
    b3 = jax.random.normal(ks[2], (ch_out,), jnp.float32) * 0.1
    m3 = jax.random.normal(ks[3], (ch_out,), jnp.float32) * 0.1
    v3 = jax.random.uniform(ks[4], (ch_out,), jnp.float32, 0.5, 1.5)
    w1 = jax.random.normal(ks[5], (ch_out, ch_in, 1, 1), jnp.float32) * 0.1
    g1 = jax.random.uniform(ks[6], (ch_out,), jnp.float32, 0.5, 1.5)
    b1 = jax.random.normal(ks[7], (ch_out,), jnp.float32) * 0.1
    m1 = jax.random.normal(ks[8], (ch_out,), jnp.float32) * 0.1
    v1 = jax.random.uniform(ks[9], (ch_out,), jnp.float32, 0.5, 1.5)
    eps = 1e-5
    return (w3, g3, b3, m3, v3), (w1, g1, b1, m1, v1), eps


if __name__ == "__main__":
    key = jax.random.PRNGKey(0)
    k_x, k_p = jax.random.split(key)
    N, C_in, C_out, H, W = 2, 4, 4, 16, 16
    x = jax.random.normal(k_x, (N, C_in, H, W), jnp.float32)
    params = _make_params(k_p, C_in, C_out)

    ref = jax.block_until_ready(_reference(x, params))

    # f32 path (exact match to the PyTorch module numerics).
    out = jax.block_until_ready(repvgg_block(x, params))
    assert out.shape == (N, C_out, H, W)
    assert jnp.max(jnp.abs(out - ref)) < 1e-4

    # bf16 matmul inputs, f32 accumulation (perf mode) -- looser tolerance.
    out_bf16 = jax.block_until_ready(
        repvgg_block(x, params, compute_dtype=jnp.bfloat16))
    assert jnp.max(jnp.abs(out_bf16 - ref)) < 5e-2

    print("KERNEL_OK")
</pallas_src>

<mosaic_0001>
module attributes {stable_mosaic.version = 11 : i64} {
  func.func @_repvgg_kernel(%arg0: i32, %arg1: i32, %arg2: i32, %arg3: memref<1x1x10x18x4xf32, #tpu.memory_space<vmem>>, %arg4: memref<36x4xf32, #tpu.memory_space<vmem>>, %arg5: memref<1x4xf32, #tpu.memory_space<vmem>>, %arg6: memref<1x8x16x4xf32, #tpu.memory_space<vmem>>) attributes {dimension_semantics = [#tpu.dimension_semantics<parallel>, #tpu.dimension_semantics<parallel>, #tpu.dimension_semantics<parallel>], iteration_bounds = array<i64: 2, 1, 2>, scalar_prefetch = 0 : i64, scratch_operands = 0 : i64, tpu.core_type = #tpu.core_type<tc>, window_params = [{transform_indices = @transform_0, window_bounds = array<i64: 1, 1, 10, 18, 4>}, {pipeline_mode = #tpu.pipeline_mode<synchronous>, transform_indices = @transform_1, window_bounds = array<i64: 36, 4>}, {pipeline_mode = #tpu.pipeline_mode<synchronous>, transform_indices = @transform_2, window_bounds = array<i64: 1, 4>}, {transform_indices = @transform_3, window_bounds = array<i64: 1, 8, 16, 4>}]} {
    %c0 = arith.constant 0 : index
    %c0_0 = arith.constant 0 : index
    %c0_1 = arith.constant 0 : index
    %c0_2 = arith.constant 0 : index
    %c0_3 = arith.constant 0 : index
    %0 = vector.load %arg3[%c0, %c0_0, %c0_1, %c0_2, %c0_3] : memref<1x1x10x18x4xf32, #tpu.memory_space<vmem>>, vector<1x1x10x18x4xf32>
    %1 = vector.shape_cast %0 : vector<1x1x10x18x4xf32> to vector<10x18x4xf32>
    %2 = vector.extract_strided_slice %1 {offsets = [0, 0, 0], sizes = [8, 16, 4], strides = [1, 1, 1]} : vector<10x18x4xf32> to vector<8x16x4xf32>
    %3 = vector.extract_strided_slice %1 {offsets = [0, 1, 0], sizes = [8, 16, 4], strides = [1, 1, 1]} : vector<10x18x4xf32> to vector<8x16x4xf32>
    %4 = vector.extract_strided_slice %1 {offsets = [0, 2, 0], sizes = [8, 16, 4], strides = [1, 1, 1]} : vector<10x18x4xf32> to vector<8x16x4xf32>
    %5 = vector.extract_strided_slice %1 {offsets = [1, 0, 0], sizes = [8, 16, 4], strides = [1, 1, 1]} : vector<10x18x4xf32> to vector<8x16x4xf32>
    %6 = vector.extract_strided_slice %1 {offsets = [1, 1, 0], sizes = [8, 16, 4], strides = [1, 1, 1]} : vector<10x18x4xf32> to vector<8x16x4xf32>
    %7 = vector.extract_strided_slice %1 {offsets = [1, 2, 0], sizes = [8, 16, 4], strides = [1, 1, 1]} : vector<10x18x4xf32> to vector<8x16x4xf32>
    %8 = vector.extract_strided_slice %1 {offsets = [2, 0, 0], sizes = [8, 16, 4], strides = [1, 1, 1]} : vector<10x18x4xf32> to vector<8x16x4xf32>
    %9 = vector.extract_strided_slice %1 {offsets = [2, 1, 0], sizes = [8, 16, 4], strides = [1, 1, 1]} : vector<10x18x4xf32> to vector<8x16x4xf32>
    %10 = vector.extract_strided_slice %1 {offsets = [2, 2, 0], sizes = [8, 16, 4], strides = [1, 1, 1]} : vector<10x18x4xf32> to vector<8x16x4xf32>
    %11 = tpu.concatenate %2, %3, %4, %5, %6, %7, %8, %9, %10 in 2 : vector<8x16x4xf32>, vector<8x16x4xf32>, vector<8x16x4xf32>, vector<8x16x4xf32>, vector<8x16x4xf32>, vector<8x16x4xf32>, vector<8x16x4xf32>, vector<8x16x4xf32>, vector<8x16x4xf32> -> vector<8x16x36xf32>
    %12 = vector.shape_cast %11 : vector<8x16x36xf32> to vector<128x36xf32>
    %c0_4 = arith.constant 0 : index
    %c0_5 = arith.constant 0 : index
    %13 = vector.load %arg4[%c0_4, %c0_5] : memref<36x4xf32, #tpu.memory_space<vmem>>, vector<36x4xf32>
    %cst = arith.constant dense<0.000000e+00> : vector<128x4xf32>
    %14 = tpu.matmul %12, %13, %cst {dimension_numbers = #tpu.dot_dimension_numbers<[1], [0], [0], [1], [0, 0, 1, 1], [], []>} : vector<128x36xf32>, vector<36x4xf32>, vector<128x4xf32> -> vector<128x4xf32>
    %c0_6 = arith.constant 0 : index
    %c0_7 = arith.constant 0 : index
    %15 = vector.load %arg5[%c0_6, %c0_7] : memref<1x4xf32, #tpu.memory_space<vmem>>, vector<1x4xf32>
    %16 = vector.broadcast %15 : vector<1x4xf32> to vector<128x4xf32>
    %17 = arith.addf %14, %16 : vector<128x4xf32>
    %cst_8 = arith.constant 0.000000e+00 : f32
    %18 = vector.broadcast %cst_8 : f32 to vector<128x4xf32>
    %19 = arith.maximumf %17, %18 : vector<128x4xf32>
    %20 = vector.shape_cast %19 : vector<128x4xf32> to vector<1x8x16x4xf32>
    %c0_9 = arith.constant 0 : index
    %c0_10 = arith.constant 0 : index
    %c0_11 = arith.constant 0 : index
    %c0_12 = arith.constant 0 : index
    %21 = vector.load %arg6[%c0_9, %c0_10, %c0_11, %c0_12] : memref<1x8x16x4xf32, #tpu.memory_space<vmem>>, vector<1x8x16x4xf32>
    tpu.vector_store %arg6[%c0_9, %c0_10, %c0_11, %c0_12], %20 {strides = array<i32>} : memref<1x8x16x4xf32, #tpu.memory_space<vmem>>, vector<1x8x16x4xf32>,
    return
  }
  func.func @transform_0(%arg0: i32, %arg1: i32, %arg2: i32) -> (i32, i32, i32, i32, i32) {
    %c0_i32 = arith.constant 0 : i32
    %c0_i32_0 = arith.constant 0 : i32
    %c0_i32_1 = arith.constant 0 : i32
    %c0_i32_2 = arith.constant 0 : i32
    return %arg0, %arg2, %c0_i32, %c0_i32_0, %c0_i32_1 : i32, i32, i32, i32, i32
  }
  func.func @transform_1(%arg0: i32, %arg1: i32, %arg2: i32) -> (i32, i32) {
    %c0_i32 = arith.constant 0 : i32
    %c0_i32_0 = arith.constant 0 : i32
    return %c0_i32, %arg1 : i32, i32
  }
  func.func @transform_2(%arg0: i32, %arg1: i32, %arg2: i32) -> (i32, i32) {
    %c0_i32 = arith.constant 0 : i32
    %c0_i32_0 = arith.constant 0 : i32
    return %c0_i32, %arg1 : i32, i32
  }
  func.func @transform_3(%arg0: i32, %arg1: i32, %arg2: i32) -> (i32, i32, i32, i32) {
    %c0_i32 = arith.constant 0 : i32
    %c0_i32_0 = arith.constant 0 : i32
    return %arg0, %arg2, %c0_i32, %arg1 : i32, i32, i32, i32
  }
}

</mosaic_0001>

<bundles_post_ra>
// kernel: tpu_custom_call.1
= control target key start
LH: loop header
LB: loop body
LE: loop exit
PB: predicated region body
PF: predicated region fallthrough
CT: control target
= control target key end

     0   :  { %s1534_s12 = smov 0   ;;  %s1536_s13 = smov 0   ;;  %s2274_s0 = inlined_call_operand.vmem [shape: f32[2,2,10,18,4], index: 0, kind: input, shape index: {}]   ;;  %s2275_s1 = inlined_call_operand.vmem [shape: f32[36,4], index: 1, kind: input, shape index: {}]   ;;  %s2276_s2 = inlined_call_operand.vmem [shape: f32[1,4], index: 2, kind: input, shape index: {}]   ;;  %s2277_s3 = inlined_call_operand.vmem [shape: f32[2,16,16,4], index: 3, kind: output, shape index: {}]  }
   0x1   :  { %s1538_s14 = smov 0   ;;  %s1540_s15 = smov 0  }
   0x2   :  { %s1542_s16 = smov 0  }
   0x3 LB: > { %s25_s17 = sadd.s32 1, %s1496_s14  ;;  %s32_s18 = sadd.s32 1, %s1500_s15  ;;  %s1504_s16 = sphi %s1542_s16, %s13_s16   ;;  %s1500_s15 = sphi %s1540_s15, %s2308_s15   ;;  %s1496_s14 = sphi %s1538_s14, %s2307_s14   ;;  %s1492_s13 = sphi %s1536_s13, %s2306_s13   ;;  %s1488_s12 = sphi %s1534_s12, %s2305_s12  }
   0x4   : > { %p26_p0 = scmp.ge.s32.totalorder %s25_s17, 2  ;;  %p1325_p1 = scmp.ge.s32.totalorder %s1504_s16, 1 }
   0x5   : > { %p183_p2 = scmp.lt.s32.totalorder %s1504_s16, 5 }
   0x6   : > { %s2310_s17 = smov (%p26_p0, %s25_s17), 0  ;;  %s2312_s18 = smov (!%p26_p0, %s32_s18), %s1500_s15 }
   0x7   : > { %p184_p3 = pnand %p1325_p1, %p183_p2  ;;  %p34_p4 = scmp.ge.s32.totalorder %s2312_s18, 2 }
   0x9   : > { %s2314_s18 = smov (%p34_p4, %s2312_s18), 0  ;;  %187 = sbr.rel (%p184_p3) target bundleno = 597 (0x255), region = 32 }
   0xe   : > { %p226_p5 = scmp.lt.s32.totalorder %s1492_s13, 1  ;;  %p228_p6 = scmp.lt.s32.totalorder %s1488_s12, 1  ;;  %vm310_vm0 = vcmask 1046528   ;;  %vm399_vm1 = vcmask 1045504   ;;  %vm999_vm2 = vcmask 1043456   ;;  %vm802_vm3 = vcmask 31744  }
   0xf   : > { %s1506_s27 = smov 4   ;;  %s1507_s28 = smov 8   ;;  %vm819_vm4 = vcmask 64512   ;;  %vm836_vm5 = vcmask 97280   ;;  %vm853_vm6 = vcmask 130048   ;;  %vm870_vm7 = vcmask 162816  }
  0x10   : > { %s2316_s13 = smov (!%p226_p5, %s1492_s13), 1  ;;  %s1508_s29 = smov 12   ;;  %vm887_vm8 = vcmask 195584   ;;  %vm904_vm9 = vcmask 228352   ;;  %vm921_vm10 = vcmask 261120   ;;  %vm950_vm11 = vcmask 293888  }
  0x11   : > { %s229_s19 = scalar_select %p228_p6, %s1488_s12, 1 }
  0x12   : > { %s1417_s20 = smul.u32 60, %s2316_s13  ;;  %s1509_s30 = smov 16  }
  0x13   : > { %s1416_s21 = smul.u32 30, %s229_s19  ;;  %s1510_s4 = smov 20  }
  0x14   : > { %s1511_s5 = smov 24   ;;  %s1512_s6 = smov 28  }
  0x15   : > { %s232_s22 = sadd.s32 %s1417_s20, %s1416_s21  ;;  %s1327_s25 = sshll.u32 %s1488_s12, 3 }
  0x16   : > { %s1326_s23 = sshll.u32 %s232_s22, 3  ;;  %s1513_s22 = smov 32  }
  0x17   : > { %s1574_s26 = scalar_lea.vmem %s2274_s0, %s1326_s23  ;;  %p245_p7 = scmp.lt.s32.totalorder %s1327_s25, 15 }
  0x18   : > { %v1577_v0 = vld [vmem:[%s1574_s26 + $0x8] sm:$0xff]  ;;  %v258_v1 = vld [vmem:[%s1574_s26 + $0x10] sm:$0x3]  ;;  %v1581_v2 = vld [vmem:[%s1574_s26] sm:$0xff] }
  0x19   : > { %v312_v3 = vrot.slane %v1577_v0, 1  ;;  %v314_v4 = vrot.slane %v258_v1, 1  ;;  %v311_v5 = vrot.slane %v1581_v2, 1  ;;  %v1586_v6 = vld [vmem:[%s1574_s26 + $0x68] sm:$0xff]  ;;  %v270_v7 = vld [vmem:[%s1574_s26 + $0x70] sm:$0x3] }
  0x1a   : > { %v332_v8 = vrot.slane %v1586_v6, 1  ;;  %v334_v9 = vrot.slane %v270_v7, 1  ;;  %v1591_v10 = vld [vmem:[%s1574_s26 + $0x60] sm:$0xff]  ;;  %v421_v14 = vrot.slane %v1586_v6, 2  ;;  %v400_v15 = vrot.slane %v1581_v2, 2  ;;  %v1627_v26 = vld [vmem:[%s1574_s26 + $0x78] sm:$0xff] }
  0x1b   : > { %v315_v11 = vsel %vm310_vm0, %v312_v3, %v314_v4  ;;  %v313_v12 = vsel %vm310_vm0, %v311_v5, %v312_v3  ;;  %v331_v13 = vrot.slane %v1591_v10, 1  ;;  %v420_v18 = vrot.slane %v1591_v10, 2  ;;  %v1630_v27 = vld [vmem:[%s1574_s26 + $0x18] sm:$0xff]  ;;  %v1633_v28 = vld [vmem:[%s1574_s26 + $0x80] sm:$0xff]  ;;  %v273_v36 = vld [vmem:[%s1574_s26 + $0x88] sm:$0x3] }
  0x1c   : > { %353 = vrot.lane.b32.xlu1 %v315_v11, %s1506_s27  ;;  %351 = vrot.lane.b32.xlu0 %v313_v12, %s1506_s27  ;;  %v1601_v16 = vsel %vm310_vm0, %v332_v8, %v334_v9  ;;  %v401_v19 = vrot.slane %v1577_v0, 2  ;;  %v423_v22 = vrot.slane %v270_v7, 2  ;;  %v403_v23 = vrot.slane %v258_v1, 2  ;;  %v1636_v29 = vld [vmem:[%s1574_s26 + $0x20] sm:$0xff]  ;;  %v261_v37 = vld [vmem:[%s1574_s26 + $0x28] sm:$0x3] }
  0x1d   : > { %v1604_v17 = vsel %vm310_vm0, %v331_v13, %v332_v8  ;;  %v1613_v20 = vsel %vm399_vm1, %v420_v18, %v421_v14  ;;  %v336_v30 = vrot.slane %v1627_v26, 1  ;;  %v337_v31 = vrot.slane %v1633_v28, 1  ;;  %v1694_v52 = vld [vmem:[%s1574_s26 + $0x90] sm:$0xff]  ;;  %v1707_v54 = vld [vmem:[%s1574_s26 + $0x98] sm:$0xff]  ;;  %v276_v62 = vld [vmem:[%s1574_s26 + $0xa0] sm:$0x3] }
  0x1e   : > { %v402_v21 = vsel %vm399_vm1, %v400_v15, %v401_v19  ;;  %v1620_v24 = vsel %vm399_vm1, %v421_v14, %v423_v22  ;;  %v404_v25 = vsel %vm399_vm1, %v401_v19, %v403_v23  ;;  %v316_v32 = vrot.slane %v1630_v27, 1  ;;  %v1697_v53 = vld [vmem:[%s1574_s26 + $0x30] sm:$0xff]  ;;  %v1710_v55 = vld [vmem:[%s1574_s26 + $0x38] sm:$0xff]  ;;  %v264_v63 = vld [vmem:[%s1574_s26 + $0x40] sm:$0x3]  ;;  %s2318_s25 = smov (!%p245_p7, %s1327_s25), 15 }
  0x1f   : > { %v317_v33 = vrot.slane %v1636_v29, 1  ;;  %v1651_v34 = vsel %vm310_vm0, %v336_v30, %v337_v31  ;;  %v339_v38 = vrot.slane %v273_v36, 1  ;;  %v319_v39 = vrot.slane %v261_v37, 1  ;;  %2291 = vst [vmem:[#allocation6_spill] sm:$0xff] %v1710_v55  ;;  %v942_v12 = vld [vmem:[%s2275_s1 + $0x20] sm:$0xf] }
  0x20   : > { %369 = vrot.lane.b32.xlu1 %v1601_v16, %s1506_s27  ;;  %367 = vrot.lane.b32.xlu0 %v1604_v17, %s1506_s27  ;;  %2287 = vst [vmem:[#allocation2_spill] sm:$0xff] %v1651_v34  ;;  %v425_v40 = vrot.slane %v1627_v26, 2  ;;  %v426_v41 = vrot.slane %v1633_v28, 2  ;;  %v405_v44 = vrot.slane %v1630_v27, 2  ;;  %v406_v45 = vrot.slane %v1636_v29, 2  ;;  %v941_v13 = vld [vmem:[%s2275_s1 + $0x18] sm:$0xff] }
  0x21   : > { %v318_v35 = vsel %vm310_vm0, %v316_v32, %v317_v33  ;;  %v1665_v42 = vsel %vm310_vm0, %v337_v31, %v339_v38  ;;  %v320_v43 = vsel %vm310_vm0, %v317_v33, %v319_v39  ;;  %v428_v48 = vrot.slane %v273_v36, 2  ;;  %1372 = vmatprep.subr.msk.mxu0 %vm999_vm2, %v942_v12  ;;  %1406 = vmatprep.subr.msk.mxu1 %vm999_vm2, %v942_v12  ;;  %v940_v18 = vld [vmem:[%s2275_s1 + $0x10] sm:$0xff]  ;;  %v939_v19 = vld [vmem:[%s2275_s1 + $0x8] sm:$0xff] }
  0x22   : > { %2288 = vst [vmem:[#allocation3_spill] sm:$0xff] %v1665_v42  ;;  %v1674_v46 = vsel %vm399_vm1, %v425_v40, %v426_v41  ;;  %v407_v47 = vsel %vm399_vm1, %v405_v44, %v406_v45  ;;  %v408_v49 = vrot.slane %v261_v37, 2  ;;  %v341_v56 = vrot.slane %v1694_v52, 1  ;;  %1373 = vmatpush3.msk.msra.mxu0 %vm999_vm2, %v942_v12  ;;  %1411 = vmatpush3.msk.msra.mxu1 %vm999_vm2, %v942_v12  ;;  %v1780_v31 = vld [vmem:[%s1574_s26 + $0xa8] sm:$0xff]  ;;  %v1804_v40 = vld [vmem:[%s1574_s26 + $0xb0] sm:$0xff] }
  0x23   : > { %2289 = vst [vmem:[#allocation4_spill] sm:$0xff] %v1674_v46  ;;  %v1687_v50 = vsel %vm399_vm1, %v426_v41, %v428_v48  ;;  %v342_v57 = vrot.slane %v1707_v54, 1  ;;  %v321_v58 = vrot.slane %v1697_v53, 1  ;;  %v322_v59 = vrot.slane %v1710_v55, 1  ;;  %1374 = vmatprep.subr.mxu0 %v941_v13  ;;  %1407 = vmatprep.subr.mxu1 %v941_v13  ;;  %2292 = vst [vmem:[#allocation7_spill] sm:$0xff] %v1780_v31  ;;  %v1783_v32 = vld [vmem:[%s1574_s26 + $0x48] sm:$0xff] }
  0x24   : > { %456 = vrot.lane.b32.xlu1 %v1613_v20, %s1507_s28  ;;  %440 = vrot.lane.b32.xlu0 %v402_v21, %s1507_s28  ;;  %2290 = vst [vmem:[#allocation5_spill] sm:$0xff] %v1687_v50  ;;  %v409_v51 = vsel %vm399_vm1, %v406_v45, %v408_v49  ;;  %v344_v1 = vrot.slane %v276_v62, 1  ;;  %v324_v3 = vrot.slane %v264_v63, 1  ;;  %v430_v4 = vrot.slane %v1694_v52, 2  ;;  %v938_v21 = vld [vmem:[%s2275_s1] sm:$0xff]  ;;  %2293 = vst [vmem:[#allocation8_spill] sm:$0xff] %v1783_v32 }
  0x25   : > { %v343_v60 = vsel %vm310_vm0, %v341_v56, %v342_v57  ;;  %v323_v61 = vsel %vm310_vm0, %v321_v58, %v322_v59  ;;  %v431_v5 = vrot.slane %v1707_v54, 2  ;;  %v410_v7 = vrot.slane %v1697_v53, 2  ;;  %1375 = vmatpush3.msra.mxu0 %v941_v13  ;;  %1412 = vmatpush3.msra.mxu1 %v941_v13  ;;  %2294 = vst [vmem:[#allocation9_spill] sm:$0xff] %v1804_v40  ;;  %v1807_v41 = vld [vmem:[%s1574_s26 + $0x50] sm:$0xff] }
  0x26   : > { %v345_v8 = vsel %vm310_vm0, %v342_v57, %v344_v1  ;;  %v325_v9 = vsel %vm310_vm0, %v322_v59, %v324_v3  ;;  %v411_v11 = vrot.slane %v1710_v55, 2  ;;  %1376 = vmatprep.subr.mxu0 %v940_v18  ;;  %1408 = vmatprep.subr.mxu1 %v940_v18  ;;  %v433_v22 = vrot.slane %v276_v62, 2  ;;  %2295 = vst [vmem:[#allocation10_spill] sm:$0xff] %v1807_v41  ;;  %v279_v59 = vld [vmem:[%s1574_s26 + $0xb8] sm:$0x3] }
  0x27   : > { %v432_v14 = vsel %vm399_vm1, %v430_v4, %v431_v5  ;;  %1377 = vmatpush3.msra.mxu0 %v940_v18  ;;  %1413 = vmatpush3.msra.mxu1 %v940_v18  ;;  %v413_v23 = vrot.slane %v264_v63, 2  ;;  %v347_v44 = vrot.slane %v1804_v40, 1  ;;  %v326_v45 = vrot.slane %v1783_v32, 1 }
  0x28   : > { %458 = vrot.lane.b32.xlu1 %v1620_v24, %s1507_s28  ;;  %442 = vrot.lane.b32.xlu0 %v404_v25, %s1507_s28  ;;  %v412_v15 = vsel %vm399_vm1, %v410_v7, %v411_v11  ;;  %v434_v25 = vsel %vm399_vm1, %v431_v5, %v433_v22  ;;  %v349_v63 = vrot.slane %v279_v59, 1  ;;  %v416_v12 = vrot.slane %v1807_v41, 2 }
  0x29   : > { %1378 = vmatprep.subr.mxu0 %v939_v19  ;;  %1409 = vmatprep.subr.mxu1 %v939_v19  ;;  %v414_v30 = vsel %vm399_vm1, %v411_v11, %v413_v23  ;;  %v415_v11 = vrot.slane %v1783_v32, 2 }
  0x2a   : > { %1379 = vmatpush3.msra.mxu0 %v939_v19  ;;  %1414 = vmatpush3.msra.mxu1 %v939_v19  ;;  %v350_v5 = vsel %vm310_vm0, %v347_v44, %v349_v63 }
  0x2b   : > { %1380 = vmatprep.subr.mxu0 %v938_v21  ;;  %1410 = vmatprep.subr.mxu1 %v938_v21  ;;  %v417_v18 = vsel %vm399_vm1, %v415_v11, %v416_v12 }
  0x2c   : > { %506 = vrot.lane.b32.xlu1 %v1627_v26, %s1508_s29  ;;  %490 = vrot.lane.b32.xlu0 %v1630_v27, %s1508_s29 }
  0x2d   : > { %1381 = vmatpush3.msra.mxu0 %v938_v21  ;;  %1415 = vmatpush3.msra.mxu1 %v938_v21 }
  0x30   : > { %508 = vrot.lane.b32.xlu1 %v1633_v28, %s1508_s29  ;;  %492 = vrot.lane.b32.xlu0 %v1636_v29, %s1508_s29 }
  0x34   : > { %560 = vrot.lane.b32.xlu1 %v1651_v34, %s1509_s30  ;;  %544 = vrot.lane.b32.xlu0 %v318_v35, %s1509_s30 }
  0x38   : > { %371 = vrot.lane.b32.xlu1 %v1651_v34, %s1506_s27  ;;  %355 = vrot.lane.b32.xlu0 %v318_v35, %s1506_s27 }
  0x3c   : > { %562 = vrot.lane.b32.xlu1 %v1665_v42, %s1509_s30  ;;  %546 = vrot.lane.b32.xlu0 %v320_v43, %s1509_s30 }
  0x40   : > { %613 = vrot.lane.b32.xlu1 %v1674_v46, %s1510_s4  ;;  %597 = vrot.lane.b32.xlu0 %v407_v47, %s1510_s4 }
  0x44   : > { %373 = vrot.lane.b32.xlu1 %v1665_v42, %s1506_s27  ;;  %357 = vrot.lane.b32.xlu0 %v320_v43, %s1506_s27  ;;  %v346_v43 = vrot.slane %v1780_v31, 1 }
  0x48   : > { %460 = vrot.lane.b32.xlu1 %v1674_v46, %s1507_s28  ;;  %444 = vrot.lane.b32.xlu0 %v407_v47, %s1507_s28  ;;  %v327_v47 = vrot.slane %v1807_v41, 1 }
  0x4a   : > { %v328_v56 = vsel %vm310_vm0, %v326_v45, %v327_v47 }
  0x4c   : > { %615 = vrot.lane.b32.xlu1 %v1687_v50, %s1510_s4  ;;  %599 = vrot.lane.b32.xlu0 %v409_v51, %s1510_s4 }
  0x50   : > { %663 = vrot.lane.b32.xlu1 %v1694_v52, %s1511_s5  ;;  %647 = vrot.lane.b32.xlu0 %v1697_v53, %s1511_s5 }
  0x54   : > { %462 = vrot.lane.b32.xlu1 %v1687_v50, %s1507_s28  ;;  %446 = vrot.lane.b32.xlu0 %v409_v51, %s1507_s28  ;;  %v348_v51 = vsel %vm310_vm0, %v346_v43, %v347_v44  ;;  %v438_v43 = vrot.slane %v279_v59, 2 }
  0x58   : > { %510 = vrot.lane.b32.xlu1 %v1694_v52, %s1508_s29  ;;  %494 = vrot.lane.b32.xlu0 %v1697_v53, %s1508_s29 }
  0x5c   : > { %665 = vrot.lane.b32.xlu1 %v1707_v54, %s1511_s5  ;;  %649 = vrot.lane.b32.xlu0 %v1710_v55, %s1511_s5 }
  0x60   : > { %717 = vrot.lane.b32.xlu1 %v343_v60, %s1512_s6  ;;  %701 = vrot.lane.b32.xlu0 %v323_v61, %s1512_s6 }
  0x64   : > { %512 = vrot.lane.b32.xlu1 %v1707_v54, %s1508_s29  ;;  %496 = vrot.lane.b32.xlu0 %v1710_v55, %s1508_s29 }
  0x68   : > { %564 = vrot.lane.b32.xlu1 %v343_v60, %s1509_s30  ;;  %548 = vrot.lane.b32.xlu0 %v323_v61, %s1509_s30 }
  0x6c   : > { %719 = vrot.lane.b32.xlu1 %v345_v8, %s1512_s6  ;;  %703 = vrot.lane.b32.xlu0 %v325_v9, %s1512_s6 }
  0x70   : > { %770 = vrot.lane.b32.xlu1 %v432_v14, %s1513_s22  ;;  %754 = vrot.lane.b32.xlu0 %v412_v15, %s1513_s22 }
  0x74   : > { %375 = vrot.lane.b32.xlu1 %v343_v60, %s1506_s27  ;;  %359 = vrot.lane.b32.xlu0 %v323_v61, %s1506_s27  ;;  %v267_v60 = vld [vmem:[%s1574_s26 + $0x58] sm:$0x3] }
  0x75   : > { %v329_v1 = vrot.slane %v267_v60, 1  ;;  %v418_v44 = vrot.slane %v267_v60, 2 }
  0x77   : > { %v330_v7 = vsel %vm310_vm0, %v327_v47, %v329_v1 }
  0x78   : > { %566 = vrot.lane.b32.xlu1 %v345_v8, %s1509_s30  ;;  %550 = vrot.lane.b32.xlu0 %v325_v9, %s1509_s30 }
  0x7c   : > { %617 = vrot.lane.b32.xlu1 %v432_v14, %s1510_s4  ;;  %601 = vrot.lane.b32.xlu0 %v412_v15, %s1510_s4 }
  0x80   : > { %772 = vrot.lane.b32.xlu1 %v434_v25, %s1513_s22  ;;  %756 = vrot.lane.b32.xlu0 %v414_v30, %s1513_s22 }
  0x84   : > { %377 = vrot.lane.b32.xlu1 %v345_v8, %s1506_s27  ;;  %361 = vrot.lane.b32.xlu0 %v325_v9, %s1506_s27  ;;  %v435_v8 = vrot.slane %v1780_v31, 2  ;;  %v436_v9 = vrot.slane %v1804_v40, 2 }
  0x88   : > { %464 = vrot.lane.b32.xlu1 %v432_v14, %s1507_s28  ;;  %448 = vrot.lane.b32.xlu0 %v412_v15, %s1507_s28  ;;  %v437_v15 = vsel %vm399_vm1, %v435_v8, %v436_v9 }
  0x8c   : > { %619 = vrot.lane.b32.xlu1 %v434_v25, %s1510_s4  ;;  %603 = vrot.lane.b32.xlu0 %v414_v30, %s1510_s4 }
  0x8e   : > { %v1785_v33 = vpop.permute.xlu1 %353  ;;  %v1787_v35 = vpop.permute.xlu0 %351 }
  0x90   : > { %667 = vrot.lane.b32.xlu1 %v1780_v31, %s1511_s5  ;;  %651 = vrot.lane.b32.xlu0 %v1783_v32, %s1511_s5 }
  0x92   : > { %v1793_v36 = vpop.permute.xlu1 %369  ;;  %v1795_v37 = vpop.permute.xlu0 %367 }
  0x94   : > { %466 = vrot.lane.b32.xlu1 %v434_v25, %s1507_s28  ;;  %450 = vrot.lane.b32.xlu0 %v414_v30, %s1507_s28 }
  0x96   : > { %v1799_v38 = vpop.permute.xlu1 %456  ;;  %v1801_v39 = vpop.permute.xlu0 %440 }
  0x98   : > { %514 = vrot.lane.b32.xlu1 %v1780_v31, %s1508_s29  ;;  %498 = vrot.lane.b32.xlu0 %v1783_v32, %s1508_s29 }
  0x9a   : > { %v1817_v48 = vpop.permute.xlu1 %458  ;;  %v1819_v49 = vpop.permute.xlu0 %442 }
  0x9c   : > { %669 = vrot.lane.b32.xlu1 %v1804_v40, %s1511_s5  ;;  %653 = vrot.lane.b32.xlu0 %v1807_v41, %s1511_s5 }
  0x9e   : > { %v1827_v57 = vpop.permute.xlu1 %506  ;;  %v1829_v58 = vpop.permute.xlu0 %490 }
  0xa0   : > { %721 = vrot.lane.b32.xlu1 %v348_v51, %s1512_s6  ;;  %705 = vrot.lane.b32.xlu0 %v328_v56, %s1512_s6 }
  0xa2   : > { %v1835_v61 = vpop.permute.xlu1 %508  ;;  %v1837_v62 = vpop.permute.xlu0 %492 }
  0xa4   : > { %516 = vrot.lane.b32.xlu1 %v1804_v40, %s1508_s29  ;;  %500 = vrot.lane.b32.xlu0 %v1807_v41, %s1508_s29  ;;  %v1919_v40 = vld [vmem:[%s1574_s26 + $0xc8] sm:$0xff] }
  0xa5   : > { %v540_v46 = vrot.slane %v1919_v40, 1 }
  0xa6   : > { %v1843_v3 = vpop.permute.xlu1 %560  ;;  %v1845_v4 = vpop.permute.xlu0 %544 }
  0xa8   : > { %568 = vrot.lane.b32.xlu1 %v348_v51, %s1509_s30  ;;  %552 = vrot.lane.b32.xlu0 %v328_v56, %s1509_s30 }
  0xaa   : > { %v372_v13 = vpop.permute.xlu1 %371  ;;  %v356_v14 = vpop.permute.xlu0 %355 }
  0xab   : > { %v813_v32 = vsel %vm802_vm3, %v1627_v26, %v372_v13  ;;  %v805_v31 = vsel %vm802_vm3, %v1630_v27, %v356_v14 }
  0xac   : > { %723 = vrot.lane.b32.xlu1 %v350_v5, %s1512_s6  ;;  %707 = vrot.lane.b32.xlu0 %v330_v7, %s1512_s6 }
  0xae   : > { %v1859_v19 = vpop.permute.xlu1 %562  ;;  %v1861_v21 = vpop.permute.xlu0 %546 }
  0xb0   : > { %774 = vrot.lane.b32.xlu1 %v437_v15, %s1513_s22  ;;  %758 = vrot.lane.b32.xlu0 %v417_v18, %s1513_s22 }
  0xb2   : > { %v1865_v22 = vpop.permute.xlu1 %613  ;;  %v1867_v23 = vpop.permute.xlu0 %597 }
  0xb4   : > { %379 = vrot.lane.b32.xlu1 %v348_v51, %s1506_s27  ;;  %363 = vrot.lane.b32.xlu0 %v328_v56, %s1506_s27  ;;  %v439_v51 = vsel %vm399_vm1, %v436_v9, %v438_v43  ;;  %v419_v56 = vsel %vm399_vm1, %v416_v12, %v418_v44  ;;  %v1902_v43 = vld [vmem:[%s1574_s26 + $0xc0] sm:$0xff] }
  0xb5   : > { %v539_v50 = vrot.slane %v1902_v43, 1 }
  0xb6   : > { %v1871_v25 = vpop.permute.xlu1 %373  ;;  %v1873_v30 = vpop.permute.xlu0 %357 }
  0xb8   : > { %570 = vrot.lane.b32.xlu1 %v350_v5, %s1509_s30  ;;  %554 = vrot.lane.b32.xlu0 %v330_v7, %s1509_s30 }
  0xba   : > { %v461_v45 = vpop.permute.xlu1 %460  ;;  %v445_v47 = vpop.permute.xlu0 %444 }
  0xbc   : > { %621 = vrot.lane.b32.xlu1 %v437_v15, %s1510_s4  ;;  %605 = vrot.lane.b32.xlu0 %v417_v18, %s1510_s4 }
  0xbe   : > { %v1881_v63 = vpop.permute.xlu1 %615  ;;  %v1883_v1 = vpop.permute.xlu0 %599 }
  0xc0   : > { %776 = vrot.lane.b32.xlu1 %v439_v51, %s1513_s22  ;;  %760 = vrot.lane.b32.xlu0 %v419_v56, %s1513_s22 }
  0xc2   : > { %v1887_v59 = vpop.permute.xlu1 %663  ;;  %v1889_v60 = vpop.permute.xlu0 %647 }
  0xc4   : > { %381 = vrot.lane.b32.xlu1 %v350_v5, %s1506_s27  ;;  %365 = vrot.lane.b32.xlu0 %v330_v7, %s1506_s27  ;;  %s1329_s27 = sshll.u32 %s2316_s13, 5 }
  0xc6   : > { %v1893_v8 = vpop.permute.xlu1 %462  ;;  %v1895_v9 = vpop.permute.xlu0 %446 }
  0xc8   : > { %468 = vrot.lane.b32.xlu1 %v437_v15, %s1507_s28  ;;  %452 = vrot.lane.b32.xlu0 %v417_v18, %s1507_s28 }
  0xca   : > { %v511_v11 = vpop.permute.xlu1 %510  ;;  %v495_v12 = vpop.permute.xlu0 %494 }
  0xcc   : > { %623 = vrot.lane.b32.xlu1 %v439_v51, %s1510_s4  ;;  %607 = vrot.lane.b32.xlu0 %v419_v56, %s1510_s4 }
  0xce   : > { %v1904_v5 = vpop.permute.xlu1 %665  ;;  %v1906_v7 = vpop.permute.xlu0 %649 }
  0xd0   : > { %671 = vrot.lane.b32.xlu1 %v1902_v43, %s1511_s5  ;;  %655 = vrot.lane.b32.xlu0 %v1591_v10, %s1511_s5 }
  0xd2   : > { %v718_v15 = vpop.permute.xlu1 %717  ;;  %v702_v18 = vpop.permute.xlu0 %701 }
  0xd4   : > { %470 = vrot.lane.b32.xlu1 %v439_v51, %s1507_s28  ;;  %454 = vrot.lane.b32.xlu0 %v419_v56, %s1507_s28  ;;  %v830_v51 = vsel %vm819_vm4, %v813_v32, %v461_v45  ;;  %v822_v56 = vsel %vm819_vm4, %v805_v31, %v445_v47  ;;  %v803_v31 = vsel %vm802_vm3, %v1581_v2, %v1787_v35 }
  0xd5   : > { %v847_v13 = vsel %vm836_vm5, %v830_v51, %v511_v11  ;;  %v839_v42 = vsel %vm836_vm5, %v822_v56, %v495_v12  ;;  %v811_v32 = vsel %vm802_vm3, %v1591_v10, %v1795_v37  ;;  %v541_v47 = vsel %vm310_vm0, %v539_v50, %v540_v46 }
  0xd6   : > { %v1914_v44 = vpop.permute.xlu1 %512  ;;  %v1916_v41 = vpop.permute.xlu0 %496  ;;  %v828_v45 = vsel %vm819_vm4, %v811_v32, %v1799_v38  ;;  %v593_v32 = vrot.slane %v1919_v40, 2 }
  0xd7   : > { %v845_v2 = vsel %vm836_vm5, %v828_v45, %v1827_v57 }
  0xd8   : > { %518 = vrot.lane.b32.xlu1 %v1902_v43, %s1508_s29  ;;  %502 = vrot.lane.b32.xlu0 %v1591_v10, %s1508_s29  ;;  %v862_v11 = vsel %vm853_vm6, %v845_v2, %v1843_v3 }
  0xd9   : > { %v879_v50 = vsel %vm870_vm7, %v862_v11, %v1865_v22 }
  0xda   : > { %v565_v27 = vpop.permute.xlu1 %564  ;;  %v549_v14 = vpop.permute.xlu0 %548  ;;  %v896_v57 = vsel %vm887_vm8, %v879_v50, %v1887_v59 }
  0xdb   : > { %v1936_v34 = vsel %vm853_vm6, %v847_v13, %v565_v27  ;;  %v1939_v55 = vsel %vm853_vm6, %v839_v42, %v549_v14  ;;  %v820_v42 = vsel %vm819_vm4, %v803_v31, %v1801_v39  ;;  %v913_v3 = vsel %vm904_vm9, %v896_v57, %v718_v15 }
  0xdc   : > { %673 = vrot.lane.b32.xlu1 %v1919_v40, %s1511_s5  ;;  %657 = vrot.lane.b32.xlu0 %v1586_v6, %s1511_s5  ;;  %v837_v10 = vsel %vm836_vm5, %v820_v42, %v1829_v58  ;;  %v806_v13 = vsel %vm802_vm3, %v1636_v29, %v1873_v30  ;;  %v592_v27 = vrot.slane %v1902_v43, 2 }
  0xdd   : > { %v854_v38 = vsel %vm853_vm6, %v837_v10, %v1845_v4  ;;  %v823_v31 = vsel %vm819_vm4, %v806_v13, %v1895_v9 }
  0xde   : > { %v720_v35 = vpop.permute.xlu1 %719  ;;  %v704_v37 = vpop.permute.xlu0 %703  ;;  %v871_v39 = vsel %vm870_vm7, %v854_v38, %v1867_v23  ;;  %v282_v23 = vld [vmem:[%s1574_s26 + $0xd0] sm:$0x3]  ;;  %v840_v30 = vsel %vm836_vm5, %v823_v31, %v1916_v41 }
  0xdf   : > { %v888_v58 = vsel %vm887_vm8, %v871_v39, %v1889_v60  ;;  %v542_v59 = vrot.slane %v282_v23, 1 }
  0xe0   : > { %725 = vrot.lane.b32.xlu1 %v541_v47, %s1512_s6  ;;  %709 = vrot.lane.b32.xlu0 %v1604_v17, %s1512_s6  ;;  %v905_v4 = vsel %vm904_vm9, %v888_v58, %v702_v18  ;;  %v814_v18 = vsel %vm802_vm3, %v1633_v28, %v1871_v25 }
  0xe1   : > { %v831_v14 = vsel %vm819_vm4, %v814_v18, %v1893_v8  ;;  %v543_v25 = vsel %vm310_vm0, %v540_v46, %v542_v59  ;;  %v812_v46 = vsel %vm802_vm3, %v1586_v6, %v1793_v36 }
  0xe2   : > { %v771_v22 = vpop.permute.xlu1 %770  ;;  %v755_v12 = vpop.permute.xlu0 %754  ;;  %v848_v29 = vsel %vm836_vm5, %v831_v14, %v1914_v44  ;;  %v594_v44 = vsel %vm399_vm1, %v592_v27, %v593_v32 }
  0xe3   : > { %v930_v51 = vsel %vm921_vm10, %v913_v3, %v771_v22  ;;  %v922_v56 = vsel %vm921_vm10, %v905_v4, %v755_v12  ;;  %v284_v4 = vld [vmem:[%s1574_s26 + $0xe0] sm:$0xff] }
  0xe4   : > { %520 = vrot.lane.b32.xlu1 %v1919_v40, %s1508_s29  ;;  %1394 = vmatprep.mubr.msk.f32.mxu1 %vm950_vm11, %v930_v51  ;;  %v829_v40 = vsel %vm819_vm4, %v812_v46, %v1817_v48  ;;  %v697_v12 = vrot.slane %v284_v4, 1  ;;  %v2296_v51 = vld [vmem:[#allocation6_spill] sm:$0xff] }
  0xe5   : > { %504 = vrot.lane.b32.xlu0 %v1586_v6, %s1508_s29  ;;  %1382 = vmatprep.mubr.msk.f32.mxu0 %vm950_vm11, %v922_v56 }
  0xe6   : > { %v376_v60 = vpop.permute.xlu1 %375  ;;  %v360_v15 = vpop.permute.xlu0 %359 }
  0xe7   : > { %v815_v11 = vsel %vm802_vm3, %v1694_v52, %v376_v60  ;;  %v283_v52 = vld [vmem:[%s1574_s26 + $0xd8] sm:$0xff] }
  0xe8   : > { %572 = vrot.lane.b32.xlu1 %v541_v47, %s1509_s30  ;;  %v696_v22 = vrot.slane %v283_v52, 1 }
  0xe9   : > { %556 = vrot.lane.b32.xlu0 %v1604_v17, %s1509_s30  ;;  %v804_v17 = vsel %vm802_vm3, %v1577_v0, %v1785_v33  ;;  %v846_v0 = vsel %vm836_vm5, %v829_v40, %v1835_v61 }
  0xea   : > { %v567_v43 = vpop.permute.xlu1 %566  ;;  %v551_v45 = vpop.permute.xlu0 %550  ;;  %v821_v41 = vsel %vm819_vm4, %v804_v17, %v1819_v49  ;;  %v863_v48 = vsel %vm853_vm6, %v846_v0, %v1859_v19 }
  0xeb   : > { %v2007_v8 = vsel %vm853_vm6, %v848_v29, %v567_v43  ;;  %v2010_v9 = vsel %vm853_vm6, %v840_v30, %v551_v45  ;;  %v838_v33 = vsel %vm836_vm5, %v821_v41, %v1837_v62  ;;  %v880_v42 = vsel %vm870_vm7, %v863_v48, %v1881_v63  ;;  %v2297_v29 = vld [vmem:[#allocation2_spill] sm:$0xff]  ;;  %v2298_v45 = vld [vmem:[#allocation3_spill] sm:$0xff] }
  0xec   : > { %727 = vrot.lane.b32.xlu1 %v543_v25, %s1512_s6  ;;  %v855_v49 = vsel %vm853_vm6, %v838_v33, %v1861_v21  ;;  %v897_v61 = vsel %vm887_vm8, %v880_v42, %v1904_v5  ;;  %v595_v5 = vrot.slane %v282_v23, 2 }
  0xed   : > { %711 = vrot.lane.b32.xlu0 %v1601_v16, %s1512_s6  ;;  %v872_v47 = vsel %vm870_vm7, %v855_v49, %v1883_v1  ;;  %v914_v19 = vsel %vm904_vm9, %v897_v61, %v720_v35 }
  0xee   : > { %v2030_v6 = vpop.permute.xlu1 %617  ;;  %v2032_v36 = vpop.permute.xlu0 %601  ;;  %v889_v62 = vsel %vm887_vm8, %v872_v47, %v1906_v7  ;;  %v2300_v47 = vld [vmem:[#allocation5_spill] sm:$0xff] }
  0xef   : > { %v906_v21 = vsel %vm904_vm9, %v889_v62, %v704_v37  ;;  %v596_v37 = vsel %vm399_vm1, %v593_v32, %v595_v5  ;;  %v749_v32 = vrot.slane %v283_v52, 2 }
  0xf0   : > { %778 = vrot.lane.b32.xlu1 %v594_v44, %s1513_s22 }
  0xf1   : > { %762 = vrot.lane.b32.xlu0 %v1613_v20, %s1513_s22 }
  0xf2   : > { %v773_v2 = vpop.permute.xlu1 %772  ;;  %v757_v63 = vpop.permute.xlu0 %756 }
  0xf3   : > { %v931_v10 = vsel %vm921_vm10, %v914_v19, %v773_v2  ;;  %v923_v1 = vsel %vm921_vm10, %v906_v21, %v757_v63 }
  0xf4   : > { %574 = vrot.lane.b32.xlu1 %v543_v25, %s1509_s30  ;;  %1395 = vmatmul.mubr.msk.f32.vlgmr.msra.gmra.mxu1 %vm950_vm11, %v931_v10  ;;  %v750_v25 = vrot.slane %v284_v4, 2  ;;  %v881_v10 = vsel %vm870_vm7, %v1936_v34, %v2030_v6 }
  0xf5   : > { %558 = vrot.lane.b32.xlu0 %v1601_v16, %s1509_s30  ;;  %1383 = vmatmul.mubr.msk.f32.vlgmr.msra.gmra.mxu0 %vm950_vm11, %v923_v1  ;;  %v807_v16 = vsel %vm802_vm3, %v1697_v53, %v360_v15  ;;  %v873_v1 = vsel %vm870_vm7, %v1939_v55, %v2032_v36 }
  0xf6   : > { %v378_v7 = vpop.permute.xlu1 %377  ;;  %v362_v35 = vpop.permute.xlu0 %361  ;;  %v751_v17 = vsel %vm399_vm1, %v749_v32, %v750_v25 }
  0xf7   : > { %v816_v23 = vsel %vm802_vm3, %v1707_v54, %v378_v7  ;;  %v808_v56 = vsel %vm802_vm3, %v2296_v51, %v362_v35 }
  0xf8   : > { %625 = vrot.lane.b32.xlu1 %v594_v44, %s1510_s4  ;;  %v2299_v44 = vld [vmem:[#allocation4_spill] sm:$0xff] }
  0xf9   : > { %609 = vrot.lane.b32.xlu0 %v1613_v20, %s1510_s4 }
  0xfa   : > { %v465_v38 = vpop.permute.xlu1 %464  ;;  %v449_v50 = vpop.permute.xlu0 %448 }
  0xfb   : > { %v832_v39 = vsel %vm819_vm4, %v815_v11, %v465_v38  ;;  %v824_v57 = vsel %vm819_vm4, %v807_v16, %v449_v50 }
  0xfc   : > { %780 = vrot.lane.b32.xlu1 %v596_v37, %s1513_s22 }
  0xfd   : > { %764 = vrot.lane.b32.xlu0 %v1620_v24, %s1513_s22 }
  0xfe   : > { %v2071_v20 = vpop.permute.xlu1 %619  ;;  %v2073_v58 = vpop.permute.xlu0 %603 }
 0x100   : > { %627 = vrot.lane.b32.xlu1 %v596_v37, %s1510_s4 }
 0x101   : > { %611 = vrot.lane.b32.xlu0 %v1620_v24, %s1510_s4  ;;  %v285_v24 = vld [vmem:[%s1574_s26 + $0xe8] sm:$0x3]  ;;  %s1328_s26 = sshll.u32 %s2318_s25, 1 }
 0x102   : > { %v668_v53 = vpop.permute.xlu1 %667  ;;  %v652_v3 = vpop.permute.xlu0 %651  ;;  %v699_v13 = vrot.slane %v285_v24, 1  ;;  %v752_v46 = vrot.slane %v285_v24, 2  ;;  %s252_s28 = sadd.s32 %s1329_s27, %s1328_s26 }
 0x103   : > { %v898_v5 = vsel %vm887_vm8, %v881_v10, %v668_v53  ;;  %v890_v7 = vsel %vm887_vm8, %v873_v1, %v652_v3  ;;  %v882_v3 = vsel %vm870_vm7, %v2007_v8, %v2071_v20  ;;  %v2301_v20 = vld [vmem:[#allocation7_spill] sm:$0xff]  ;;  %s1330_s4 = sshll.u32 %s252_s28, 3 }
 0x104   : > { %675 = vrot.lane.b32.xlu1 %v283_v52, %s1511_s5  ;;  %v700_v30 = vsel %vm310_vm0, %v697_v12, %v699_v13  ;;  %v753_v0 = vsel %vm399_vm1, %v750_v25, %v752_v46  ;;  %s2225_s7 = scalar_lea.vmem %s2277_s3, %s1330_s4 }
 0x105   : > { %659 = vrot.lane.b32.xlu0 %v1627_v26, %s1511_s5  ;;  %v698_v26 = vsel %vm310_vm0, %v696_v22, %v697_v12 }
 0x106   : > { %v467_v59 = vpop.permute.xlu1 %466  ;;  %v451_v60 = vpop.permute.xlu0 %450 }
 0x107   : > { %v833_v15 = vsel %vm819_vm4, %v816_v23, %v467_v59  ;;  %v825_v18 = vsel %vm819_vm4, %v808_v56, %v451_v60 }
 0x108   : > { %677 = vrot.lane.b32.xlu1 %v284_v4, %s1511_s5  ;;  %v874_v4 = vsel %vm870_vm7, %v2010_v9, %v2073_v58 }
 0x109   : > { %661 = vrot.lane.b32.xlu0 %v1633_v28, %s1511_s5 }
 0x10a   : > { %v515_v27 = vpop.permute.xlu1 %514  ;;  %v499_v54 = vpop.permute.xlu0 %498 }
 0x10b   : > { %v849_v14 = vsel %vm836_vm5, %v832_v39, %v515_v27  ;;  %v841_v31 = vsel %vm836_vm5, %v824_v57, %v499_v54 }
 0x10c   : > { %729 = vrot.lane.b32.xlu1 %v698_v26, %s1512_s6 }
 0x10d   : > { %713 = vrot.lane.b32.xlu0 %v2297_v29, %s1512_s6 }
 0x10e   : > { %v670_v43 = vpop.permute.xlu1 %669  ;;  %v654_v28 = vpop.permute.xlu0 %653 }
 0x10f   : > { %v899_v22 = vsel %vm887_vm8, %v882_v3, %v670_v43  ;;  %v891_v12 = vsel %vm887_vm8, %v874_v4, %v654_v28 }
 0x110   : > { %731 = vrot.lane.b32.xlu1 %v700_v30, %s1512_s6 }
 0x111   : > { %715 = vrot.lane.b32.xlu0 %v2298_v45, %s1512_s6 }
 0x112   : > { %v722_v40 = vpop.permute.xlu1 %721  ;;  %v706_v41 = vpop.permute.xlu0 %705 }
 0x113   : > { %v915_v35 = vsel %vm904_vm9, %v898_v5, %v722_v40  ;;  %v907_v37 = vsel %vm904_vm9, %v890_v7, %v706_v41 }
 0x114   : > { %782 = vrot.lane.b32.xlu1 %v751_v17, %s1513_s22 }
 0x115   : > { %766 = vrot.lane.b32.xlu0 %v2299_v44, %s1513_s22 }
 0x116   : > { %v517_v33 = vpop.permute.xlu1 %516  ;;  %v501_v48 = vpop.permute.xlu0 %500 }
 0x117   : > { %v850_v49 = vsel %vm836_vm5, %v833_v15, %v517_v33  ;;  %v842_v42 = vsel %vm836_vm5, %v825_v18, %v501_v48  ;;  %v2302_v15 = vld [vmem:[#allocation8_spill] sm:$0xff] }
 0x118   : > { %784 = vrot.lane.b32.xlu1 %v753_v0, %s1513_s22 }
 0x119   : > { %768 = vrot.lane.b32.xlu0 %v2300_v47, %s1513_s22 }
 0x11a   : > { %v569_v61 = vpop.permute.xlu1 %568  ;;  %v553_v62 = vpop.permute.xlu0 %552 }
 0x11b   : > { %v2114_v19 = vsel %vm853_vm6, %v849_v14, %v569_v61  ;;  %v2117_v21 = vsel %vm853_vm6, %v841_v31, %v553_v62 }
 0x11e   : > { %v724_v2 = vpop.permute.xlu1 %723  ;;  %v708_v63 = vpop.permute.xlu0 %707 }
 0x11f   : > { %v916_v23 = vsel %vm904_vm9, %v899_v22, %v724_v2  ;;  %v908_v51 = vsel %vm904_vm9, %v891_v12, %v708_v63 }
 0x122   : > { %v775_v11 = vpop.permute.xlu1 %774  ;;  %v759_v16 = vpop.permute.xlu0 %758 }
 0x123   : > { %v932_v38 = vsel %vm921_vm10, %v915_v35, %v775_v11  ;;  %v924_v50 = vsel %vm921_vm10, %v907_v37, %v759_v16 }
 0x124   : > { %1385 = vmatprep.mubr.msk.f32.mxu0 %vm950_vm11, %v924_v50  ;;  %1397 = vmatprep.mubr.msk.f32.mxu1 %vm950_vm11, %v932_v38 }
 0x126   : > { %v380_v34 = vpop.permute.xlu1 %379  ;;  %v364_v55 = vpop.permute.xlu0 %363 }
 0x127   : > { %v817_v58 = vsel %vm802_vm3, %v2301_v20, %v380_v34  ;;  %v809_v18 = vsel %vm802_vm3, %v2302_v15, %v364_v55 }
 0x12a   : > { %v571_v6 = vpop.permute.xlu1 %570  ;;  %v555_v36 = vpop.permute.xlu0 %554 }
 0x12b   : > { %v867_v39 = vsel %vm853_vm6, %v850_v49, %v571_v6  ;;  %v859_v57 = vsel %vm853_vm6, %v842_v42, %v555_v36 }
 0x12e   : > { %v622_v52 = vpop.permute.xlu1 %621  ;;  %v606_v53 = vpop.permute.xlu0 %605 }
 0x12f   : > { %v883_v42 = vsel %vm870_vm7, %v2114_v19, %v622_v52  ;;  %v875_v47 = vsel %vm870_vm7, %v2117_v21, %v606_v53 }
 0x132   : > { %v777_v56 = vpop.permute.xlu1 %776  ;;  %v761_v59 = vpop.permute.xlu0 %760 }
 0x133   : > { %v933_v60 = vsel %vm921_vm10, %v916_v23, %v777_v56  ;;  %v925_v24 = vsel %vm921_vm10, %v908_v51, %v761_v59 }
 0x134   : > { %1386 = vmatmul.mubr.msk.f32.gmra.mxu0 %vm950_vm11, %v925_v24  ;;  %1398 = vmatmul.mubr.msk.f32.gmra.mxu1 %vm950_vm11, %v933_v60 }
 0x136   : > { %v2149_v8 = vpop.permute.xlu1 %381  ;;  %v2151_v9 = vpop.permute.xlu0 %365 }
 0x13a   : > { %v469_v26 = vpop.permute.xlu1 %468  ;;  %v453_v13 = vpop.permute.xlu0 %452 }
 0x13b   : > { %v834_v27 = vsel %vm819_vm4, %v817_v58, %v469_v26  ;;  %v826_v54 = vsel %vm819_vm4, %v809_v18, %v453_v13  ;;  %v2303_v58 = vld [vmem:[#allocation9_spill] sm:$0xff]  ;;  %v2304_v13 = vld [vmem:[#allocation10_spill] sm:$0xff] }
 0x13c   : > { %v818_v15 = vsel %vm802_vm3, %v2303_v58, %v2149_v8 }
 0x13e   : > { %v624_v14 = vpop.permute.xlu1 %623  ;;  %v608_v31 = vpop.permute.xlu0 %607 }
 0x13f   : > { %v884_v11 = vsel %vm870_vm7, %v867_v39, %v624_v14  ;;  %v876_v16 = vsel %vm870_vm7, %v859_v57, %v608_v31  ;;  %v810_v14 = vsel %vm802_vm3, %v2304_v13, %v2151_v9 }
 0x142   : > { %v672_v32 = vpop.permute.xlu1 %671  ;;  %v656_v25 = vpop.permute.xlu0 %655 }
 0x143   : > { %v900_v61 = vsel %vm887_vm8, %v883_v42, %v672_v32  ;;  %v892_v62 = vsel %vm887_vm8, %v875_v47, %v656_v25 }
 0x146   : > { %v471_v29 = vpop.permute.xlu1 %470  ;;  %v455_v30 = vpop.permute.xlu0 %454 }
 0x147   : > { %v827_v32 = vsel %vm819_vm4, %v810_v14, %v455_v30 }
 0x14a   : > { %v519_v43 = vpop.permute.xlu1 %518  ;;  %v503_v28 = vpop.permute.xlu0 %502 }
 0x14b   : > { %v851_v56 = vsel %vm836_vm5, %v834_v27, %v519_v43  ;;  %v843_v60 = vsel %vm836_vm5, %v826_v54, %v503_v28  ;;  %v835_v27 = vsel %vm819_vm4, %v818_v15, %v471_v29 }
 0x14e   : > { %v674_v45 = vpop.permute.xlu1 %673  ;;  %v658_v17 = vpop.permute.xlu0 %657 }
 0x14f   : > { %v901_v38 = vsel %vm887_vm8, %v884_v11, %v674_v45  ;;  %v893_v50 = vsel %vm887_vm8, %v876_v16, %v658_v17 }
 0x152   : > { %v726_v46 = vpop.permute.xlu1 %725  ;;  %v710_v40 = vpop.permute.xlu0 %709 }
 0x153   : > { %v917_v2 = vsel %vm904_vm9, %v900_v61, %v726_v46  ;;  %v909_v10 = vsel %vm904_vm9, %v892_v62, %v710_v40 }
 0x156   : > { %v521_v41 = vpop.permute.xlu1 %520 }
 0x157   : > { %v505_v44 = vpop.permute.xlu0 %504  ;;  %v852_v25 = vsel %vm836_vm5, %v835_v27, %v521_v41 }
 0x158   : > { %v844_v45 = vsel %vm836_vm5, %v827_v32, %v505_v44 }
 0x15a   : > { %v573_v0 = vpop.permute.xlu1 %572 }
 0x15b   : > { %v557_v33 = vpop.permute.xlu0 %556  ;;  %v868_v24 = vsel %vm853_vm6, %v851_v56, %v573_v0 }
 0x15c   : > { %v860_v18 = vsel %vm853_vm6, %v843_v60, %v557_v33 }
 0x15e   : > { %v728_v48 = vpop.permute.xlu1 %727 }
 0x15f   : > { %v712_v49 = vpop.permute.xlu0 %711  ;;  %v918_v34 = vsel %vm904_vm9, %v901_v38, %v728_v48 }
 0x160   : > { %v910_v6 = vsel %vm904_vm9, %v893_v50, %v712_v49 }
 0x162   : > { %v779_v63 = vpop.permute.xlu1 %778 }
 0x163   : > { %v934_v1 = vsel %vm921_vm10, %v917_v2, %v779_v63  ;;  %v763_v5 = vpop.permute.xlu0 %762  ;;  %v1331_v2 = vld [vmem:[%s2276_s2] ss:$0 sm:$0xff] }
 0x164   : > { %v926_v7 = vsel %vm921_vm10, %v909_v10, %v763_v5  ;;  %1400 = vmatprep.mubr.msk.f32.mxu1 %vm950_vm11, %v934_v1 }
 0x165   : > { %1388 = vmatprep.mubr.msk.f32.mxu0 %vm950_vm11, %v926_v7 }
 0x166   : > { %v575_v19 = vpop.permute.xlu1 %574 }
 0x167   : > { %v559_v21 = vpop.permute.xlu0 %558  ;;  %v869_v17 = vsel %vm853_vm6, %v852_v25, %v575_v19 }
 0x168   : > { %v861_v40 = vsel %vm853_vm6, %v844_v45, %v559_v21 }
 0x16a   : > { %v626_v35 = vpop.permute.xlu1 %625 }
 0x16b   : > { %v610_v37 = vpop.permute.xlu0 %609  ;;  %v885_v26 = vsel %vm870_vm7, %v868_v24, %v626_v35 }
 0x16c   : > { %v877_v31 = vsel %vm870_vm7, %v860_v18, %v610_v37 }
 0x16e   : > { %v781_v55 = vpop.permute.xlu1 %780 }
 0x16f   : > { %v935_v36 = vsel %vm921_vm10, %v918_v34, %v781_v55  ;;  %v765_v52 = vpop.permute.xlu0 %764 }
 0x170   : > { %v927_v53 = vsel %vm921_vm10, %v910_v6, %v765_v52  ;;  %1401 = vmatmul.mubr.msk.f32.gmra.mxu1 %vm950_vm11, %v935_v36 }
 0x171   : > { %1389 = vmatmul.mubr.msk.f32.gmra.mxu0 %vm950_vm11, %v927_v53 }
 0x172   : > { %v628_v39 = vpop.permute.xlu1 %627 }
 0x173   : > { %v612_v57 = vpop.permute.xlu0 %611  ;;  %v886_v30 = vsel %vm870_vm7, %v869_v17, %v628_v39 }
 0x174   : > { %v878_v0 = vsel %vm870_vm7, %v861_v40, %v612_v57 }
 0x176   : > { %v676_v3 = vpop.permute.xlu1 %675 }
 0x177   : > { %v660_v4 = vpop.permute.xlu0 %659  ;;  %v902_v54 = vsel %vm887_vm8, %v885_v26, %v676_v3 }
 0x178   : > { %v894_v8 = vsel %vm887_vm8, %v877_v31, %v660_v4 }
 0x17a   : > { %v678_v22 = vpop.permute.xlu1 %677 }
 0x17b   : > { %v662_v12 = vpop.permute.xlu0 %661  ;;  %v903_v44 = vsel %vm887_vm8, %v886_v30, %v678_v22 }
 0x17c   : > { %v895_v33 = vsel %vm887_vm8, %v878_v0, %v662_v12 }
 0x17e   : > { %v730_v23 = vpop.permute.xlu1 %729 }
 0x17f   : > { %v714_v51 = vpop.permute.xlu0 %713  ;;  %v919_v43 = vsel %vm904_vm9, %v902_v54, %v730_v23 }
 0x180   : > { %v911_v9 = vsel %vm904_vm9, %v894_v8, %v714_v51 }
 0x182   : > { %v732_v59 = vpop.permute.xlu1 %731 }
 0x183   : > { %v716_v20 = vpop.permute.xlu0 %715  ;;  %v920_v48 = vsel %vm904_vm9, %v903_v44, %v732_v59 }
 0x184   : > { %v912_v42 = vsel %vm904_vm9, %v895_v33, %v716_v20 }
 0x186   : > { %v783_v28 = vpop.permute.xlu1 %782 }
 0x187   : > { %v936_v29 = vsel %vm921_vm10, %v919_v43, %v783_v28  ;;  %v767_v46 = vpop.permute.xlu0 %766 }
 0x188   : > { %v928_v41 = vsel %vm921_vm10, %v911_v9, %v767_v46  ;;  %1403 = vmatprep.mubr.msk.f32.mxu1 %vm950_vm11, %v936_v29 }
 0x189   : > { %1391 = vmatprep.mubr.msk.f32.mxu0 %vm950_vm11, %v928_v41 }
 0x18a   : > { %v785_v49 = vpop.permute.xlu1 %784 }
 0x18b   : > { %v937_v47 = vsel %vm921_vm10, %v920_v48, %v785_v49  ;;  %v769_v61 = vpop.permute.xlu0 %768 }
 0x18c   : > { %v929_v62 = vsel %vm921_vm10, %v912_v42, %v769_v61  ;;  %1404 = vmatmul.mubr.msk.f32.gmra.mxu1 %vm950_vm11, %v937_v47 }
 0x18d   : > { %1392 = vmatmul.mubr.msk.f32.gmra.mxu0 %vm950_vm11, %v929_v62 }
 0x1b4   : > { %v1396_v63 = vpop.f32.mrf.mxu1 }
 0x1b5   : > { %v1384_v10 = vpop.f32.mrf.mxu0  ;;  %v1115_v1 = vadd.f32 %v1396_v63, %v1331_v2 }
 0x1b6   : > { %v1075_v5 = vadd.f32 %v1384_v10, %v1331_v2  ;;  %v1109_v7 = vpop.f32.mrf.mxu1 }
 0x1b7   : > { %v1157_v19 = vmax.f32 %v1115_v1, 0.0  ;;  %v1069_v21 = vpop.f32.mrf.mxu0  ;;  %v1110_v35 = vadd.f32 %v1331_v2, %v1109_v7 }
 0x1b8   : > { %v1149_v37 = vmax.f32 %v1075_v5, 0.0  ;;  %v1070_v11 = vadd.f32 %v1331_v2, %v1069_v21 }
 0x1b9   : > { %1173 = vst.msk [vmem:[%s2225_s7 + $0x48] sm:$0xff] %vm802_vm3, %v1157_v19  ;;  %v1156_v16 = vmax.f32 %v1110_v35, 0.0 }
 0x1ba   : > { %1165 = vst.msk [vmem:[%s2225_s7 + $0x8] sm:$0xff] %vm802_vm3, %v1149_v37  ;;  %v1148_v38 = vmax.f32 %v1070_v11, 0.0 }
 0x1bb   : > { %1172 = vst.msk [vmem:[%s2225_s7 + $0x40] sm:$0xff] %vm802_vm3, %v1156_v16 }
 0x1bc   : > { %1164 = vst.msk [vmem:[%s2225_s7] sm:$0xff] %vm802_vm3, %v1148_v38 }
 0x1f4   : > { %v1387_v50 = vpop.f32.mrf.mxu0  ;;  %v1399_v34 = vpop.f32.mrf.mxu1 }
 0x1f5   : > { %v1085_v55 = vadd.f32 %v1387_v50, %v1331_v2  ;;  %v1125_v6 = vadd.f32 %v1399_v34, %v1331_v2 }
 0x1f6   : > { %v1079_v36 = vpop.f32.mrf.mxu0  ;;  %v1119_v52 = vpop.f32.mrf.mxu1 }
 0x1f7   : > { %v1151_v53 = vmax.f32 %v1085_v55, 0.0  ;;  %v1159_v39 = vmax.f32 %v1125_v6, 0.0  ;;  %v1080_v57 = vadd.f32 %v1331_v2, %v1079_v36  ;;  %v1120_v3 = vadd.f32 %v1331_v2, %v1119_v52 }
 0x1f9   : > { %1167 = vst.msk [vmem:[%s2225_s7 + $0x18] sm:$0xff] %vm802_vm3, %v1151_v53  ;;  %1175 = vst.msk [vmem:[%s2225_s7 + $0x58] sm:$0xff] %vm802_vm3, %v1159_v39  ;;  %v1150_v4 = vmax.f32 %v1080_v57, 0.0  ;;  %v1158_v22 = vmax.f32 %v1120_v3, 0.0 }
 0x1fb   : > { %1166 = vst.msk [vmem:[%s2225_s7 + $0x10] sm:$0xff] %vm802_vm3, %v1150_v4  ;;  %1174 = vst.msk [vmem:[%s2225_s7 + $0x50] sm:$0xff] %vm802_vm3, %v1158_v22 }
 0x230   : > { %v1402_v12 = vpop.f32.mrf.mxu1 }
 0x231   : > { %v1390_v23 = vpop.f32.mrf.mxu0  ;;  %v1135_v51 = vadd.f32 %v1402_v12, %v1331_v2 }
 0x232   : > { %v1095_v56 = vadd.f32 %v1390_v23, %v1331_v2  ;;  %v1129_v59 = vpop.f32.mrf.mxu1 }
 0x233   : > { %v1161_v60 = vmax.f32 %v1135_v51, 0.0  ;;  %v1089_v24 = vpop.f32.mrf.mxu0  ;;  %v1130_v20 = vadd.f32 %v1331_v2, %v1129_v59 }
 0x234   : > { %v1153_v58 = vmax.f32 %v1095_v56, 0.0  ;;  %v1090_v15 = vadd.f32 %v1331_v2, %v1089_v24 }
 0x235   : > { %1177 = vst.msk [vmem:[%s2225_s7 + $0x68] sm:$0xff] %vm802_vm3, %v1161_v60  ;;  %v1160_v18 = vmax.f32 %v1130_v20, 0.0 }
 0x236   : > { %1169 = vst.msk [vmem:[%s2225_s7 + $0x28] sm:$0xff] %vm802_vm3, %v1153_v58  ;;  %v1152_v26 = vmax.f32 %v1090_v15, 0.0 }
 0x237   : > { %1176 = vst.msk [vmem:[%s2225_s7 + $0x60] sm:$0xff] %vm802_vm3, %v1160_v18 }
 0x238   : > { %1168 = vst.msk [vmem:[%s2225_s7 + $0x20] sm:$0xff] %vm802_vm3, %v1152_v26 }
 0x24c   : > { %v1405_v13 = vpop.f32.mrf.mxu1 }
 0x24d   : > { %v1393_v14 = vpop.f32.mrf.mxu0  ;;  %v1145_v27 = vadd.f32 %v1405_v13, %v1331_v2 }
 0x24e   : > { %v1105_v31 = vadd.f32 %v1393_v14, %v1331_v2  ;;  %v1139_v54 = vpop.f32.mrf.mxu1 }
 0x24f   : > { %v1163_v32 = vmax.f32 %v1145_v27, 0.0  ;;  %v1099_v25 = vpop.f32.mrf.mxu0  ;;  %v1140_v8 = vadd.f32 %v1331_v2, %v1139_v54 }
 0x250   : > { %v1155_v43 = vmax.f32 %v1105_v31, 0.0  ;;  %v1100_v28 = vadd.f32 %v1331_v2, %v1099_v25 }
 0x251   : > { %1179 = vst.msk [vmem:[%s2225_s7 + $0x78] sm:$0xff] %vm802_vm3, %v1163_v32  ;;  %v1162_v45 = vmax.f32 %v1140_v8, 0.0 }
 0x252   : > { %1171 = vst.msk [vmem:[%s2225_s7 + $0x38] sm:$0xff] %vm802_vm3, %v1155_v43  ;;  %v1154_v17 = vmax.f32 %v1100_v28, 0.0 }
 0x253   : > { %1178 = vst.msk [vmem:[%s2225_s7 + $0x70] sm:$0xff] %vm802_vm3, %v1162_v45 }
 0x254   : > { %1170 = vst.msk [vmem:[%s2225_s7 + $0x30] sm:$0xff] %vm802_vm3, %v1154_v17 }
 0x255 PF: > { %s13_s16 = sadd.s32 1, %s1504_s16   ;;  %s2305_s12 = smov %s1496_s14 }
 0x256   : > { %p10_p8 = scmp.ge.s32.totalorder %s13_s16, 6   ;;  %s2306_s13 = smov %s1500_s15 }
 0x257   : > { %s2307_s14 = smov %s2310_s17  ;;  %s2308_s15 = smov %s2314_s18 }
 0x258   :  { %12 = sbr.rel (!%p10_p8) target bundleno = 3 (0x3), region = 68 }

</bundles_post_ra>
